<compile_context>
chip_gen: v5e
topology: v5e:2x2
jax: 0.10.0
libtpu: 0.0.40
codegen_flags: <defaults>
</compile_context>

<pallas_src>
import functools

import jax
import jax.numpy as jnp
from jax import lax
from jax.experimental import pallas as pl
from jax.experimental.pallas import tpu as pltpu


# --------------------------- fused Pallas kernel --------------------------- #

def _sum_pca_dist_kernel(xy_ref, m_ref, o_ref, acc_ref, *, n_x):
    """K-tiled fused feature-projection + pairwise PCA distance.

    Per K step :  acc += [x; y]_tile @ M_tile      (single stacked MXU matmul)
    Last K step:  o[j, i] = max(0, ||px_i||^2 + ||py_j||^2 - 2 (py @ px^T)[j, i])
    """
    k = pl.program_id(0)

    @pl.when(k == 0)
    def _init():
        acc_ref[...] = jnp.zeros_like(acc_ref)

    acc_ref[...] += jnp.dot(xy_ref[...], m_ref[...],
                            preferred_element_type=jnp.float32)

    @pl.when(k == pl.num_programs(0) - 1)
    def _finalize():
        a = acc_ref[...]                                     # (Bx+By, R) f32
        px = a[:n_x]                                         # (Bx, R)
        py = a[n_x:]                                         # (By, R)
        nx = jnp.sum(px * px, axis=1)[None, :]               # (1, Bx)
        ny = jnp.sum(py * py, axis=1, keepdims=True)         # (By, 1)
        gram = lax.dot_general(                              # (By, Bx) = py @ px^T
            py, px,
            dimension_numbers=(((1,), (1,)), ((), ())),
            preferred_element_type=jnp.float32)
        # Gram form can dip slightly negative from cancellation -> clamp at 0.
        # TODO(synk): for near-identical x/y pairs switch to a direct-difference
        # finalize (better relative precision) if tolerances ever require it.
        o_ref[...] = jnp.maximum(ny + nx - 2.0 * gram, 0.0).astype(o_ref.dtype)


def _pick_tk(D, R, b_rows, budget_bytes=20 * 1024 * 1024):
    """K-tile size from an explicit VMEM budget (conservative for all of
    v5e / v6e / v7x once vmem_limit_bytes is raised to 32 MiB).

    Per-K-step buffers: 3-deep M tile (tk*R*2B) + double-buffered stacked
    activation (2 * b_rows * tk * 2B); fixed: f32 accumulator + tiny output.
    D is assumed already padded to a multiple of 128.
    """
    fixed = b_rows * R * 4
    per_tk = 3 * R * 2 + 2 * b_rows * 2
    tk_budget = max(128, (budget_bytes - fixed) // per_tk)
    tk_budget = (tk_budget // 128) * 128
    if D <= tk_budget:
        return D                       # single un-tiled K block, grid=(1,)
    best, t = 128, 128                 # largest 128-multiple divisor within budget
    while t <= tk_budget:
        if D % t == 0:
            best = t
        t += 128
    return best


def pairwise_pca_distance(xy_bf16, m_bf16, n_x):
    """out[j, i] = || (x[i] - y[j]) @ M ||^2  for xy = [x; y]  -> shape (By, Bx)."""
    b_rows, D = xy_bf16.shape
    R = m_bf16.shape[1]
    n_y = b_rows - n_x
    tk = _pick_tk(D, R, b_rows)
    n_k = D // tk

    if n_k > 1:
        # DMA-latency exposed at tiny batch: deepen the dominant (weight) stream.
        m_spec = pl.BlockSpec((tk, R), lambda k: (k, 0),
                              pipeline_mode=pl.Buffered(3))
    else:
        m_spec = pl.BlockSpec((tk, R), lambda k: (k, 0))

    # TODO(synk): for large By on v7x, add a leading "parallel" By grid axis so
    # both TensorCores get work; at the demo batch sizes it would be pure overhead.
    # TODO(synk): for production batches, pad Bx/By to sublane multiples and keep
    # the output lane dim >= 128; optionally quantize M (int8 on v5e/v6e, fp8 on v7x).
    return pl.pallas_call(
        functools.partial(_sum_pca_dist_kernel, n_x=n_x),
        out_shape=jax.ShapeDtypeStruct((n_y, n_x), jnp.float32),
        grid=(n_k,),
        in_specs=[
            pl.BlockSpec((b_rows, tk), lambda k: (0, k)),
            m_spec,
        ],
        out_specs=pl.BlockSpec((n_y, n_x), lambda k: (0, 0)),
        scratch_shapes=[
            pltpu.VMEM((b_rows, R), jnp.float32),
        ],
        compiler_params=pltpu.CompilerParams(
            dimension_semantics=("arbitrary",),      # K is a reduction axis
            vmem_limit_bytes=32 * 1024 * 1024,
        ),
    )(xy_bf16, m_bf16)


# ----------------------- metric folding (param prep) ----------------------- #

def fold_pca_metric(W, comp_vecs, sv, indices, factor=1.0):
    """Fold feature weights, index gather, PCA projection, 1/sv, and an optional
    ScaleMetric factor into one (D, R) projection matrix (f32).
    The feature bias is dropped: it cancels exactly in model(x) - model(y)."""
    M = W[:, indices] @ comp_vecs.T                          # (D, R)
    M = M * jnp.sqrt(1.0 / sv)[None, :]                      # fold 1/sv into columns
    # TODO(synk): a negative ScaleMetric factor cannot be folded via sqrt; apply
    # it to the kernel output instead if ever needed.
    return M * jnp.sqrt(jnp.asarray(factor, jnp.float32))


def fold_sum_metric(M1, M2):
    """SumMetric(m1, m2): d1 + d2 == ||(x-y)[M1 | M2]||^2 (exact for PCA metrics).

    Returns the MXU-ready projection: D padded to a 128 multiple and cast to bf16
    ONCE here, so the forward path never re-converts M through HBM."""
    M = jnp.concatenate([M1, M2], axis=1)                    # (D, R1 + R2), f32
    D = M.shape[0]
    D_pad = ((D + 127) // 128) * 128
    if D_pad != D:
        M = jnp.pad(M, ((0, D_pad - D), (0, 0)))             # zero rows: exact
    return M.astype(jnp.bfloat16)


@functools.partial(jax.jit, static_argnames=("dim",))
def sum_metric_forward(x, y, M_sum_bf16, dim=None):
    """Equivalent of SumMetric(pca1, pca2).forward(x, y, dim=dim)."""
    Bx, By = x.shape[0], y.shape[0]
    x_flat = x.reshape(Bx, -1)                               # NCHW flatten (C,H,W)
    y_flat = y.reshape(By, -1)
    D = x_flat.shape[1]
    D_pad = M_sum_bf16.shape[0]
    # Single stacked activation: one matmul stream, one accumulator in the kernel.
    xy = jnp.concatenate([x_flat, y_flat], axis=0).astype(jnp.bfloat16)
    if D_pad != D:
        xy = jnp.pad(xy, ((0, 0), (0, D_pad - D)))           # matches zero rows of M
    out = pairwise_pca_distance(xy, M_sum_bf16, Bx)          # (By, Bx)
    if dim is None:                 # torch .sum(None) reduces everything
        return jnp.sum(out)
    return out                      # (By, Bx) pairwise distances for dim=-1


# ------------------------------ params & check ----------------------------- #

def init_pca_params(key, in_dim, latent_dim, reduced_dim):
    k_w, k_v, k_s, k_i = jax.random.split(key, 4)
    W = jax.random.normal(k_w, (in_dim, latent_dim), jnp.float32) * 0.02
    A = jax.random.normal(k_v, (reduced_dim, reduced_dim), jnp.float32)
    comp_vecs, _ = jnp.linalg.qr(A)                          # orthonormal (R, R)
    sv = jax.random.uniform(k_s, (reduced_dim,), jnp.float32, 0.5, 2.0)
    indices = jnp.sort(jax.random.permutation(k_i, latent_dim)[:reduced_dim])
    # Note: bias omitted — it cancels in the pairwise difference.
    return {"W": W, "comp_vecs": comp_vecs, "sv": sv, "indices": indices}


def _reference_sum_metric(x, y, p1, p2):
    """Pure-JAX unfolded reference (f32) to validate the algebraic folding."""
    def pca_dist(p):
        Bx, By = x.shape[0], y.shape[0]
        fx = (x.reshape(Bx, -1) @ p["W"])[:, p["indices"]]
        fy = (y.reshape(By, -1) @ p["W"])[:, p["indices"]]
        diff = fx[None, :, :] - fy[:, None, :]               # (By, Bx, R)
        proj = jnp.einsum("yxr,sr->yxs", diff, p["comp_vecs"])
        return jnp.sum(proj * proj / p["sv"], axis=-1)       # (By, Bx)
    return pca_dist(p1) + pca_dist(p2)


if __name__ == "__main__":
    B, C, H, Wd = 2, 4, 16, 16
    latent_dim = 256
    reduced_dim = 128

    key = jax.random.PRNGKey(0)
    kx, ky, k1, k2 = jax.random.split(key, 4)
    x = jax.random.normal(kx, (B, C, H, Wd), jnp.float32)
    y = jax.random.normal(ky, (B, C, H, Wd), jnp.float32)

    p1 = init_pca_params(k1, C * H * Wd, latent_dim, reduced_dim)
    p2 = init_pca_params(k2, C * H * Wd, latent_dim, reduced_dim)

    M1 = fold_pca_metric(p1["W"], p1["comp_vecs"], p1["sv"], p1["indices"])
    M2 = fold_pca_metric(p2["W"], p2["comp_vecs"], p2["sv"], p2["indices"])
    M_sum = fold_sum_metric(M1, M2)                          # (D_pad, R1 + R2), bf16

    out = jax.block_until_ready(sum_metric_forward(x, y, M_sum, dim=-1))
    assert out.shape == (B, B)
    assert bool(jnp.all(jnp.isfinite(out)))

    ref = _reference_sum_metric(x, y, p1, p2)
    assert bool(jnp.allclose(out, ref, rtol=5e-2, atol=5e-1)), (out, ref)

    out_scalar = jax.block_until_ready(sum_metric_forward(x, y, M_sum, dim=None))
    assert out_scalar.shape == ()
    assert bool(jnp.isfinite(out_scalar))

    print("KERNEL_OK")
</pallas_src>

<mosaic_0001>
module attributes {stable_mosaic.version = 11 : i64} {
  func.func @_sum_pca_dist_kernel(%arg0: i32, %arg1: memref<4x1024xbf16, #tpu.memory_space<vmem>>, %arg2: memref<1024x256xbf16, #tpu.memory_space<vmem>>, %arg3: memref<2x2xf32, #tpu.memory_space<vmem>>, %arg4: memref<4x256xf32, #tpu.memory_space<vmem>>) attributes {dimension_semantics = [#tpu.dimension_semantics<arbitrary>], iteration_bounds = array<i64: 1>, scalar_prefetch = 0 : i64, scratch_operands = 1 : i64, tpu.core_type = #tpu.core_type<tc>, window_params = [{transform_indices = @transform_0, window_bounds = array<i64: 4, 1024>}, {transform_indices = @transform_1, window_bounds = array<i64: 1024, 256>}, {pipeline_mode = #tpu.pipeline_mode<synchronous>, transform_indices = @transform_2, window_bounds = array<i64: 2, 2>}]} {
    %c0_i32 = arith.constant 0 : i32
    %0 = arith.cmpi eq, %arg0, %c0_i32 : i32
    %1 = arith.extui %0 : i1 to i32
    %c0_i32_0 = arith.constant 0 : i32
    %2 = arith.cmpi ne, %1, %c0_i32_0 : i32
    scf.if %2 {
      %cst_10 = arith.constant 0.000000e+00 : f32
      %12 = vector.broadcast %cst_10 : f32 to vector<4x256xf32>
      %c0_11 = arith.constant 0 : index
      %c0_12 = arith.constant 0 : index
      %13 = vector.load %arg4[%c0_11, %c0_12] : memref<4x256xf32, #tpu.memory_space<vmem>>, vector<4x256xf32>
      tpu.vector_store %arg4[%c0_11, %c0_12], %12 {strides = array<i32>} : memref<4x256xf32, #tpu.memory_space<vmem>>, vector<4x256xf32>,
    } else {
    }
    %c0 = arith.constant 0 : index
    %c0_1 = arith.constant 0 : index
    %3 = vector.load %arg4[%c0, %c0_1] : memref<4x256xf32, #tpu.memory_space<vmem>>, vector<4x256xf32>
    %c0_2 = arith.constant 0 : index
    %c0_3 = arith.constant 0 : index
    %4 = vector.load %arg1[%c0_2, %c0_3] : memref<4x1024xbf16, #tpu.memory_space<vmem>>, vector<4x1024xbf16>
    %c0_4 = arith.constant 0 : index
    %c0_5 = arith.constant 0 : index
    %5 = vector.load %arg2[%c0_4, %c0_5] : memref<1024x256xbf16, #tpu.memory_space<vmem>>, vector<1024x256xbf16>
    %cst = arith.constant dense<0.000000e+00> : vector<4x256xf32>
    %6 = tpu.matmul %4, %5, %cst {dimension_numbers = #tpu.dot_dimension_numbers<[1], [0], [0], [1], [0, 0, 1, 1], [], []>} : vector<4x1024xbf16>, vector<1024x256xbf16>, vector<4x256xf32> -> vector<4x256xf32>
    %7 = arith.addf %3, %6 : vector<4x256xf32>
    %c0_6 = arith.constant 0 : index
    %c0_7 = arith.constant 0 : index
    %8 = vector.load %arg4[%c0_6, %c0_7] : memref<4x256xf32, #tpu.memory_space<vmem>>, vector<4x256xf32>
    tpu.vector_store %arg4[%c0_6, %c0_7], %7 {strides = array<i32>} : memref<4x256xf32, #tpu.memory_space<vmem>>, vector<4x256xf32>,
    %c0_i32_8 = arith.constant 0 : i32
    %9 = arith.cmpi eq, %arg0, %c0_i32_8 : i32
    %10 = arith.extui %9 : i1 to i32
    %c0_i32_9 = arith.constant 0 : i32
    %11 = arith.cmpi ne, %10, %c0_i32_9 : i32
    scf.if %11 {
      %c0_10 = arith.constant 0 : index
      %c0_11 = arith.constant 0 : index
      %12 = vector.load %arg4[%c0_10, %c0_11] : memref<4x256xf32, #tpu.memory_space<vmem>>, vector<4x256xf32>
      %13 = vector.extract_strided_slice %12 {offsets = [0, 0], sizes = [2, 256], strides = [1, 1]} : vector<4x256xf32> to vector<2x256xf32>
      %14 = vector.extract_strided_slice %12 {offsets = [2, 0], sizes = [2, 256], strides = [1, 1]} : vector<4x256xf32> to vector<2x256xf32>
      %15 = arith.mulf %13, %13 : vector<2x256xf32>
      %cst_12 = arith.constant dense<0.000000e+00> : vector<2xf32>
      %16 = vector.multi_reduction <add>, %15, %cst_12 [1] : vector<2x256xf32> to vector<2xf32>
      %17 = vector.shape_cast %16 : vector<2xf32> to vector<1x2xf32>
      %18 = arith.mulf %14, %14 : vector<2x256xf32>
      %cst_13 = arith.constant dense<0.000000e+00> : vector<2xf32>
      %19 = vector.multi_reduction <add>, %18, %cst_13 [1] : vector<2x256xf32> to vector<2xf32>
      %20 = vector.shape_cast %19 : vector<2xf32> to vector<2x1xf32>
      %cst_14 = arith.constant dense<0.000000e+00> : vector<2x2xf32>
      %21 = tpu.matmul %14, %13, %cst_14 {dimension_numbers = #tpu.dot_dimension_numbers<[1], [1], [0], [0], [0, 0, 1, 0], [], []>} : vector<2x256xf32>, vector<2x256xf32>, vector<2x2xf32> -> vector<2x2xf32>
      %22 = vector.broadcast %20 : vector<2x1xf32> to vector<2x2xf32>
      %23 = vector.broadcast %17 : vector<1x2xf32> to vector<2x2xf32>
      %24 = arith.addf %22, %23 : vector<2x2xf32>
      %cst_15 = arith.constant 2.000000e+00 : f32
      %25 = vector.broadcast %cst_15 : f32 to vector<2x2xf32>
      %26 = arith.mulf %25, %21 : vector<2x2xf32>
      %27 = arith.subf %24, %26 : vector<2x2xf32>
      %cst_16 = arith.constant 0.000000e+00 : f32
      %28 = vector.broadcast %cst_16 : f32 to vector<2x2xf32>
      %29 = arith.maximumf %27, %28 : vector<2x2xf32>
      %c0_17 = arith.constant 0 : index
      %c0_18 = arith.constant 0 : index
      %30 = vector.load %arg3[%c0_17, %c0_18] : memref<2x2xf32, #tpu.memory_space<vmem>>, vector<2x2xf32>
      tpu.vector_store %arg3[%c0_17, %c0_18], %29 {strides = array<i32>} : memref<2x2xf32, #tpu.memory_space<vmem>>, vector<2x2xf32>,
    } else {
    }
    return
  }
  func.func @transform_0(%arg0: i32) -> (i32, i32) {
    %c0_i32 = arith.constant 0 : i32
    %c0_i32_0 = arith.constant 0 : i32
    return %c0_i32, %arg0 : i32, i32
  }
  func.func @transform_1(%arg0: i32) -> (i32, i32) {
    %c0_i32 = arith.constant 0 : i32
    %c0_i32_0 = arith.constant 0 : i32
    return %arg0, %c0_i32 : i32, i32
  }
  func.func @transform_2(%arg0: i32) -> (i32, i32) {
    %c0_i32 = arith.constant 0 : i32
    %c0_i32_0 = arith.constant 0 : i32
    %c0_i32_1 = arith.constant 0 : i32
    return %c0_i32, %c0_i32_0 : i32, i32
  }
}

</mosaic_0001>

<bundles_post_ra>
// kernel: sum_metric_forward.1
= control target key start
LH: loop header
LB: loop body
LE: loop exit
PB: predicated region body
PF: predicated region fallthrough
CT: control target
= control target key end

     0   :  { %7 = vsyncpa [#allocation4], 0  ;;  %s1912_s0 = inlined_call_operand.vmem [shape: bf16[4,1024], index: 0, kind: input, shape index: {}]   ;;  %s1913_s1 = inlined_call_operand.hbm [shape: bf16[1024,256], index: 1, kind: input, shape index: {}]   ;;  %s1914_s2 = inlined_call_operand.hbm [shape: f32[2,2], index: 2, kind: output, shape index: {}]  }
   0x1   :  { %8 = vsyncpa [#allocation5], 0  ;;  %s15_s11 = sshll.u32 %s1913_s1, 4  ;;  %s1849_s12 = smov [#allocation3]   ;;  %s16_s11 = int_to_ptr.hbm [resolvable:$true] %s15_s11 }
   0x2   :  { %s17_s13 = sshll.u32 %s1849_s12, 4  ;;  %s1850_s14 = smov 128   ;;  %s18_s13 = int_to_ptr.vmem [resolvable:$true] %s17_s13 }
   0x3   :  { %s1851_s15 = smov 8  }
   0x4   :  { %23 = dma.hbm_to_vmem [thread:$0]  %s16_s11, 16384, %s18_s13, [#allocation4], %s1850_s14, %s1850_s14, %s1851_s15  }
   0x5   :  { %1845 = dma.done.wait [#allocation4], 16384  }
   0x6   :  { %1846 = vsyncadd [#allocation4], 4294950912  ;;  %v1211_v0 = vld [vmem:[#allocation3 + $0x70] sm:$0xf]  ;;  %v1680_v1 = vld [vmem:[#allocation3 + $0x74] sm:$0xf0] }
   0x7   :  { %v1275_v2 = vld [vmem:[#allocation3 + $0xf0] sm:$0xf]  ;;  %v1212_v3 = vor.u32 %v1680_v1, %v1211_v0  ;;  %v1696_v4 = vld [vmem:[#allocation3 + $0xf4] sm:$0xf0]  ;;  %v1203_v11 = vld [vmem:[#allocation3 + $0x60] sm:$0xf] }
   0x8   :  { %v1339_v5 = vld [vmem:[#allocation3 + $0x170] sm:$0xf]  ;;  %v1712_v6 = vld [vmem:[#allocation3 + $0x174] sm:$0xf0]  ;;  %v1276_v7 = vor.u32 %v1696_v4, %v1275_v2  ;;  %v1678_v13 = vld [vmem:[#allocation3 + $0x64] sm:$0xf0] }
   0x9   :  { %v1340_v8 = vor.u32 %v1712_v6, %v1339_v5  ;;  %v1403_v9 = vld [vmem:[#allocation3 + $0x1f0] sm:$0xf]  ;;  %v1728_v10 = vld [vmem:[#allocation3 + $0x1f4] sm:$0xf0]  ;;  %825 = vmatpush.bf16.msra.mxu0 %v1212_v3  ;;  %v1267_v14 = vld [vmem:[#allocation3 + $0xe0] sm:$0xf]  ;;  %v1204_v16 = vor.u32 %v1678_v13, %v1203_v11 }
   0xa   :  { %v1404_v12 = vor.u32 %v1728_v10, %v1403_v9  ;;  %v1694_v15 = vld [vmem:[#allocation3 + $0xe4] sm:$0xf0]  ;;  %838 = vmatpush.bf16.msra.mxu1 %v1276_v7  ;;  %v1331_v18 = vld [vmem:[#allocation3 + $0x160] sm:$0xf]  ;;  %v1195_v23 = vld [vmem:[#allocation3 + $0x50] sm:$0xf] }
   0xb   :  { %851 = vmatpush.bf16.msra.mxu2 %v1340_v8  ;;  %v1268_v17 = vor.u32 %v1694_v15, %v1267_v14  ;;  %v1710_v19 = vld [vmem:[#allocation3 + $0x164] sm:$0xf0]  ;;  %v1395_v20 = vld [vmem:[#allocation3 + $0x1e0] sm:$0xf]  ;;  %v1676_v24 = vld [vmem:[#allocation3 + $0x54] sm:$0xf0] }
   0xc   :  { %864 = vmatpush.bf16.msra.mxu3 %v1404_v12  ;;  %v1332_v21 = vor.u32 %v1710_v19, %v1331_v18  ;;  %v1726_v22 = vld [vmem:[#allocation3 + $0x1e4] sm:$0xf0]  ;;  %v1259_v26 = vld [vmem:[#allocation3 + $0xd0] sm:$0xf]  ;;  %v1692_v27 = vld [vmem:[#allocation3 + $0xd4] sm:$0xf0]  ;;  %v1196_v29 = vor.u32 %v1676_v24, %v1195_v23 }
   0xd   :  { %v1396_v25 = vor.u32 %v1726_v22, %v1395_v20  ;;  %v1323_v28 = vld [vmem:[#allocation3 + $0x150] sm:$0xf]  ;;  %826 = vmatpush.bf16.msra.mxu0 %v1204_v16  ;;  %v1708_v30 = vld [vmem:[#allocation3 + $0x154] sm:$0xf0]  ;;  %v1260_v33 = vor.u32 %v1692_v27, %v1259_v26  ;;  %v1187_v35 = vld [vmem:[#allocation3 + $0x40] sm:$0xf] }
   0xe   :  { %v1387_v31 = vld [vmem:[#allocation3 + $0x1d0] sm:$0xf]  ;;  %v1724_v32 = vld [vmem:[#allocation3 + $0x1d4] sm:$0xf0]  ;;  %839 = vmatpush.bf16.msra.mxu1 %v1268_v17  ;;  %v1324_v34 = vor.u32 %v1708_v30, %v1323_v28  ;;  %v1674_v36 = vld [vmem:[#allocation3 + $0x44] sm:$0xf0] }
   0xf   :  { %852 = vmatpush.bf16.msra.mxu2 %v1332_v21  ;;  %v1251_v37 = vld [vmem:[#allocation3 + $0xc0] sm:$0xf]  ;;  %v1388_v38 = vor.u32 %v1724_v32, %v1387_v31  ;;  %v1690_v39 = vld [vmem:[#allocation3 + $0xc4] sm:$0xf0]  ;;  %v1188_v44 = vor.u32 %v1674_v36, %v1187_v35  ;;  %v1179_v47 = vld [vmem:[#allocation3 + $0x30] sm:$0xf] }
  0x10   :  { %865 = vmatpush.bf16.msra.mxu3 %v1396_v25  ;;  %v1315_v40 = vld [vmem:[#allocation3 + $0x140] sm:$0xf]  ;;  %v1706_v41 = vld [vmem:[#allocation3 + $0x144] sm:$0xf0]  ;;  %v1252_v45 = vor.u32 %v1690_v39, %v1251_v37  ;;  %v1672_v48 = vld [vmem:[#allocation3 + $0x34] sm:$0xf0] }
  0x11   :  { %v1379_v42 = vld [vmem:[#allocation3 + $0x1c0] sm:$0xf]  ;;  %v1722_v43 = vld [vmem:[#allocation3 + $0x1c4] sm:$0xf0]  ;;  %827 = vmatpush.bf16.msra.mxu0 %v1196_v29  ;;  %v1316_v46 = vor.u32 %v1706_v41, %v1315_v40  ;;  %v1243_v49 = vld [vmem:[#allocation3 + $0xb0] sm:$0xf]  ;;  %v1180_v56 = vor.u32 %v1672_v48, %v1179_v47 }
  0x12   :  { %840 = vmatpush.bf16.msra.mxu1 %v1260_v33  ;;  %v1380_v50 = vor.u32 %v1722_v43, %v1379_v42  ;;  %v1688_v51 = vld [vmem:[#allocation3 + $0xb4] sm:$0xf0]  ;;  %v1307_v52 = vld [vmem:[#allocation3 + $0x130] sm:$0xf]  ;;  %v1171_v59 = vld [vmem:[#allocation3 + $0x20] sm:$0xf] }
  0x13   :  { %853 = vmatpush.bf16.msra.mxu2 %v1324_v34  ;;  %v1704_v53 = vld [vmem:[#allocation3 + $0x134] sm:$0xf0]  ;;  %v1371_v54 = vld [vmem:[#allocation3 + $0x1b0] sm:$0xf]  ;;  %v1244_v57 = vor.u32 %v1688_v51, %v1243_v49  ;;  %v1670_v60 = vld [vmem:[#allocation3 + $0x24] sm:$0xf0] }
  0x14   :  { %866 = vmatpush.bf16.msra.mxu3 %v1388_v38  ;;  %v1720_v55 = vld [vmem:[#allocation3 + $0x1b4] sm:$0xf0]  ;;  %v1308_v58 = vor.u32 %v1704_v53, %v1307_v52  ;;  %v1235_v61 = vld [vmem:[#allocation3 + $0xa0] sm:$0xf]  ;;  %v1686_v63 = vld [vmem:[#allocation3 + $0xa4] sm:$0xf0]  ;;  %v1172_v4 = vor.u32 %v1670_v60, %v1171_v59 }
  0x15   :  { %828 = vmatpush.bf16.msra.mxu0 %v1188_v44  ;;  %v1372_v62 = vor.u32 %v1720_v55, %v1371_v54  ;;  %v1299_v0 = vld [vmem:[#allocation3 + $0x120] sm:$0xf]  ;;  %v1702_v1 = vld [vmem:[#allocation3 + $0x124] sm:$0xf0]  ;;  %v1236_v5 = vor.u32 %v1686_v63, %v1235_v61  ;;  %v1163_v7 = vld [vmem:[#allocation3 + $0x10] sm:$0xf] }
  0x16   :  { %841 = vmatpush.bf16.msra.mxu1 %v1252_v45  ;;  %v1363_v2 = vld [vmem:[#allocation3 + $0x1a0] sm:$0xf]  ;;  %v1718_v3 = vld [vmem:[#allocation3 + $0x1a4] sm:$0xf0]  ;;  %v1300_v6 = vor.u32 %v1702_v1, %v1299_v0  ;;  %v1668_v8 = vld [vmem:[#allocation3 + $0x14] sm:$0xf0] }
  0x17   :  { %854 = vmatpush.bf16.msra.mxu2 %v1316_v46  ;;  %v1227_v9 = vld [vmem:[#allocation3 + $0x90] sm:$0xf]  ;;  %v1364_v10 = vor.u32 %v1718_v3, %v1363_v2  ;;  %v1684_v11 = vld [vmem:[#allocation3 + $0x94] sm:$0xf0]  ;;  %v1164_v16 = vor.u32 %v1668_v8, %v1163_v7  ;;  %v1155_v17 = vld [vmem:[#allocation3] sm:$0xf] }
  0x18   :  { %867 = vmatpush.bf16.msra.mxu3 %v1380_v50  ;;  %v1291_v12 = vld [vmem:[#allocation3 + $0x110] sm:$0xf]  ;;  %v1700_v13 = vld [vmem:[#allocation3 + $0x114] sm:$0xf0]  ;;  %v1666_v18 = vld [vmem:[#allocation3 + $0x4] sm:$0xf0]  ;;  %v1228_v19 = vor.u32 %v1684_v11, %v1227_v9 }
  0x19   :  { %829 = vmatpush.bf16.msra.mxu0 %v1180_v56  ;;  %v1355_v14 = vld [vmem:[#allocation3 + $0x190] sm:$0xf]  ;;  %v1716_v15 = vld [vmem:[#allocation3 + $0x194] sm:$0xf0]  ;;  %v1292_v20 = vor.u32 %v1700_v13, %v1291_v12  ;;  %v1219_v21 = vld [vmem:[#allocation3 + $0x80] sm:$0xf]  ;;  %v1156_v31 = vor.u32 %v1666_v18, %v1155_v17 }
  0x1a   :  { %842 = vmatpush.bf16.msra.mxu1 %v1244_v57  ;;  %v1682_v22 = vld [vmem:[#allocation3 + $0x84] sm:$0xf0]  ;;  %v1283_v23 = vld [vmem:[#allocation3 + $0x100] sm:$0xf]  ;;  %v1356_v24 = vor.u32 %v1716_v15, %v1355_v14  ;;  %v1467_v28 = vld [vmem:[#allocation3 + $0x270] sm:$0xf] }
  0x1b   :  { %855 = vmatpush.bf16.msra.mxu2 %v1308_v58  ;;  %v1698_v25 = vld [vmem:[#allocation3 + $0x104] sm:$0xf0]  ;;  %v1347_v26 = vld [vmem:[#allocation3 + $0x180] sm:$0xf]  ;;  %v1744_v29 = vld [vmem:[#allocation3 + $0x274] sm:$0xf0]  ;;  %v1220_v35 = vor.u32 %v1682_v22, %v1219_v21 }
  0x1c   :  { %868 = vmatpush.bf16.msra.mxu3 %v1372_v62  ;;  %v1714_v27 = vld [vmem:[#allocation3 + $0x184] sm:$0xf0]  ;;  %v1531_v30 = vld [vmem:[#allocation3 + $0x2f0] sm:$0xf]  ;;  %v1760_v32 = vld [vmem:[#allocation3 + $0x2f4] sm:$0xf0]  ;;  %v1284_v36 = vor.u32 %v1698_v25, %v1283_v23  ;;  %v1468_v40 = vor.u32 %v1744_v29, %v1467_v28 }
  0x1d   :  { %830 = vmatpush.bf16.msra.mxu0 %v1172_v4  ;;  %v1595_v33 = vld [vmem:[#allocation3 + $0x370] sm:$0xf]  ;;  %v1776_v34 = vld [vmem:[#allocation3 + $0x374] sm:$0xf0]  ;;  %v1348_v39 = vor.u32 %v1714_v27, %v1347_v26  ;;  %v1532_v41 = vor.u32 %v1760_v32, %v1531_v30  ;;  %v1459_v43 = vld [vmem:[#allocation3 + $0x260] sm:$0xf] }
  0x1e   :  { %843 = vmatpush.bf16.msra.mxu1 %v1236_v5  ;;  %v1659_v37 = vld [vmem:[#allocation3 + $0x3f0] sm:$0xf]  ;;  %v1792_v38 = vld [vmem:[#allocation3 + $0x3f4] sm:$0xf0]  ;;  %v1596_v42 = vor.u32 %v1776_v34, %v1595_v33  ;;  %v1742_v44 = vld [vmem:[#allocation3 + $0x264] sm:$0xf0] }
  0x1f   :  { %856 = vmatpush.bf16.msra.mxu2 %v1300_v6  ;;  %v1523_v45 = vld [vmem:[#allocation3 + $0x2e0] sm:$0xf]  ;;  %v1660_v46 = vor.u32 %v1792_v38, %v1659_v37  ;;  %v1758_v47 = vld [vmem:[#allocation3 + $0x2e4] sm:$0xf0]  ;;  %v1460_v52 = vor.u32 %v1742_v44, %v1459_v43  ;;  %v1451_v53 = vld [vmem:[#allocation3 + $0x250] sm:$0xf] }
  0x20   :  { %869 = vmatpush.bf16.msra.mxu3 %v1364_v10  ;;  %v1587_v48 = vld [vmem:[#allocation3 + $0x360] sm:$0xf]  ;;  %v1774_v49 = vld [vmem:[#allocation3 + $0x364] sm:$0xf0]  ;;  %v1740_v54 = vld [vmem:[#allocation3 + $0x254] sm:$0xf0]  ;;  %v1524_v55 = vor.u32 %v1758_v47, %v1523_v45 }
  0x21   :  { %831 = vmatpush.bf16.msra.mxu0 %v1164_v16  ;;  %v1651_v50 = vld [vmem:[#allocation3 + $0x3e0] sm:$0xf]  ;;  %v1790_v51 = vld [vmem:[#allocation3 + $0x3e4] sm:$0xf0]  ;;  %v1588_v56 = vor.u32 %v1774_v49, %v1587_v48  ;;  %v1515_v57 = vld [vmem:[#allocation3 + $0x2d0] sm:$0xf]  ;;  %v1452_v1 = vor.u32 %v1740_v54, %v1451_v53 }
  0x22   :  { %844 = vmatpush.bf16.msra.mxu1 %v1228_v19  ;;  %v1756_v58 = vld [vmem:[#allocation3 + $0x2d4] sm:$0xf0]  ;;  %v1652_v60 = vor.u32 %v1790_v51, %v1651_v50  ;;  %v1579_v61 = vld [vmem:[#allocation3 + $0x350] sm:$0xf]  ;;  %v1443_v2 = vld [vmem:[#allocation3 + $0x240] sm:$0xf] }
  0x23   :  { %857 = vmatpush.bf16.msra.mxu2 %v1292_v20  ;;  %v34_v59 = vld [vmem:[%s1912_s0] sm:$0xff]  ;;  %v1643_v63 = vld [vmem:[#allocation3 + $0x3d0] sm:$0xf]  ;;  %v1516_v3 = vor.u32 %v1756_v58, %v1515_v57  ;;  %v1738_v5 = vld [vmem:[#allocation3 + $0x244] sm:$0xf0]  ;;  %vm1036_vm0 = vcmask 1043456  }
  0x24   :  { %870 = vmatpush.bf16.msra.mxu3 %v1356_v24  ;;  %v1772_v62 = vld [vmem:[#allocation3 + $0x354] sm:$0xf0]  ;;  %165 = vst [vmem:[#allocation1] ss:$4 sm:$0xff] %v34_v59  ;;  %v1507_v6 = vld [vmem:[#allocation3 + $0x2c0] sm:$0xf]  ;;  %v1444_v15 = vor.u32 %v1738_v5, %v1443_v2 }
  0x25   :  { %832 = vmatpush.bf16.msra.mxu0 %v1156_v31  ;;  %v1788_v0 = vld [vmem:[#allocation3 + $0x3d4] sm:$0xf0]  ;;  %v1580_v4 = vor.u32 %v1772_v62, %v1579_v61  ;;  %v1754_v7 = vld [vmem:[#allocation3 + $0x2c4] sm:$0xf0]  ;;  %v1571_v9 = vld [vmem:[#allocation3 + $0x340] sm:$0xf] }
  0x26   :  { %845 = vmatpush.bf16.msra.mxu1 %v1220_v35  ;;  %v1644_v8 = vor.u32 %v1788_v0, %v1643_v63  ;;  %v1770_v10 = vld [vmem:[#allocation3 + $0x344] sm:$0xf0]  ;;  %v1635_v11 = vld [vmem:[#allocation3 + $0x3c0] sm:$0xf]  ;;  %v1435_v13 = vld [vmem:[#allocation3 + $0x230] sm:$0xf]  ;;  %v1508_v20 = vor.u32 %v1754_v7, %v1507_v6 }
  0x27   :  { %858 = vmatpush.bf16.msra.mxu2 %v1284_v36  ;;  %v1786_v12 = vld [vmem:[#allocation3 + $0x3c4] sm:$0xf0]  ;;  %v1736_v14 = vld [vmem:[#allocation3 + $0x234] sm:$0xf0]  ;;  %v1499_v16 = vld [vmem:[#allocation3 + $0x2b0] sm:$0xf]  ;;  %v1572_v21 = vor.u32 %v1770_v10, %v1571_v9 }
  0x28   :  { %871 = vmatpush.bf16.msra.mxu3 %v1348_v39  ;;  %v1752_v17 = vld [vmem:[#allocation3 + $0x2b4] sm:$0xf0]  ;;  %v1563_v18 = vld [vmem:[#allocation3 + $0x330] sm:$0xf]  ;;  %v1636_v24 = vor.u32 %v1786_v12, %v1635_v11  ;;  %v1436_v29 = vor.u32 %v1736_v14, %v1435_v13  ;;  %v1427_v32 = vld [vmem:[#allocation3 + $0x220] sm:$0xf] }
  0x29   :  { %877 = vmatpush.bf16.msrb.mxu0 %v1468_v40  ;;  %v1768_v19 = vld [vmem:[#allocation3 + $0x334] sm:$0xf0]  ;;  %v1627_v27 = vld [vmem:[#allocation3 + $0x3b0] sm:$0xf]  ;;  %v1500_v30 = vor.u32 %v1752_v17, %v1499_v16  ;;  %v1734_v33 = vld [vmem:[#allocation3 + $0x224] sm:$0xf0] }
  0x2a   :  { %890 = vmatpush.bf16.msrb.mxu1 %v1532_v41  ;;  %v1784_v28 = vld [vmem:[#allocation3 + $0x3b4] sm:$0xf0]  ;;  %v1564_v31 = vor.u32 %v1768_v19, %v1563_v18  ;;  %v1491_v34 = vld [vmem:[#allocation3 + $0x2a0] sm:$0xf]  ;;  %v1750_v36 = vld [vmem:[#allocation3 + $0x2a4] sm:$0xf0]  ;;  %v1428_v41 = vor.u32 %v1734_v33, %v1427_v32 }
  0x2b   :  { %903 = vmatpush.bf16.msrb.mxu2 %v1596_v42  ;;  %v1874_v22 = vld.sshfl [vmem:[#allocation1 + $0x10] sm:$0xff pattern:$0x73625140]  ;;  %v1876_v23 = vld.sshfl [vmem:[#allocation1] sm:$0xff pattern:$0x73625140]  ;;  %v1628_v35 = vor.u32 %v1784_v28, %v1627_v27  ;;  %v1492_v44 = vor.u32 %v1750_v36, %v1491_v34 }
  0x2c   :  { %916 = vmatpush.bf16.msrb.mxu3 %v1660_v46  ;;  %859 = vmatmul.bf16.vlgmr.msra.gmra.mxu2 %v1874_v22  ;;  %v1879_v25 = vld.sshfl [vmem:[#allocation1 + $0x18] sm:$0xff pattern:$0x73625140]  ;;  %v1881_v26 = vld.sshfl [vmem:[#allocation1 + $0x8] sm:$0xff pattern:$0x73625140] }
  0x2d   :  { %878 = vmatpush.bf16.msrb.mxu0 %v1460_v52  ;;  %872 = vmatmul.bf16.vlgmr.msra.gmra.mxu3 %v1879_v25  ;;  %v1555_v37 = vld [vmem:[#allocation3 + $0x320] sm:$0xf]  ;;  %v1766_v38 = vld [vmem:[#allocation3 + $0x324] sm:$0xf0]  ;;  %v1419_v42 = vld [vmem:[#allocation3 + $0x210] sm:$0xf] }
  0x2e   :  { %891 = vmatpush.bf16.msrb.mxu1 %v1524_v55  ;;  %833 = vmatmul.bf16.vlgmr.msra.gmra.mxu0 %v1876_v23  ;;  %v1619_v39 = vld [vmem:[#allocation3 + $0x3a0] sm:$0xf]  ;;  %v1782_v40 = vld [vmem:[#allocation3 + $0x3a4] sm:$0xf0]  ;;  %v1732_v43 = vld [vmem:[#allocation3 + $0x214] sm:$0xf0]  ;;  %v1556_v45 = vor.u32 %v1766_v38, %v1555_v37 }
  0x2f   :  { %904 = vmatpush.bf16.msrb.mxu2 %v1588_v56  ;;  %846 = vmatmul.bf16.vlgmr.msra.gmra.mxu1 %v1881_v26  ;;  %v1483_v46 = vld [vmem:[#allocation3 + $0x290] sm:$0xf]  ;;  %v1748_v47 = vld [vmem:[#allocation3 + $0x294] sm:$0xf0]  ;;  %v35_v48 = vld [vmem:[%s1912_s0 + $0x8] sm:$0xff]  ;;  %v1620_v49 = vor.u32 %v1782_v40, %v1619_v39  ;;  %v1420_v54 = vor.u32 %v1732_v43, %v1419_v42  ;;  %vm1052_vm1 = vcmask 1041408  }
  0x30   :  { %917 = vmatpush.bf16.msrb.mxu3 %v1652_v60  ;;  %v1547_v50 = vld [vmem:[#allocation3 + $0x310] sm:$0xf]  ;;  %v1764_v51 = vld [vmem:[#allocation3 + $0x314] sm:$0xf0]  ;;  %168 = vst [vmem:[#allocation1 + $0x20] ss:$4 sm:$0xff] %v35_v48  ;;  %v1484_v57 = vor.u32 %v1748_v47, %v1483_v46 }
  0x31   :  { %879 = vmatpush.bf16.msrb.mxu0 %v1452_v1  ;;  %v1611_v52 = vld [vmem:[#allocation3 + $0x390] sm:$0xf]  ;;  %v1780_v53 = vld [vmem:[#allocation3 + $0x394] sm:$0xf0]  ;;  %v1411_v55 = vld [vmem:[#allocation3 + $0x200] sm:$0xf]  ;;  %v1548_v58 = vor.u32 %v1764_v51, %v1547_v50 }
  0x32   :  { %892 = vmatpush.bf16.msrb.mxu1 %v1516_v3  ;;  %v1730_v56 = vld [vmem:[#allocation3 + $0x204] sm:$0xf0]  ;;  %v1475_v59 = vld [vmem:[#allocation3 + $0x280] sm:$0xf]  ;;  %v1612_v62 = vor.u32 %v1780_v53, %v1611_v52  ;;  %v1679_v2 = vld [vmem:[#allocation3 + $0x74] sm:$0xf] }
  0x33   :  { %905 = vmatpush.bf16.msrb.mxu2 %v1580_v4  ;;  %v1746_v60 = vld [vmem:[#allocation3 + $0x284] sm:$0xf0]  ;;  %v1539_v61 = vld [vmem:[#allocation3 + $0x300] sm:$0xf]  ;;  %v1213_v3 = vld [vmem:[#allocation3 + $0x78] sm:$0xf0]  ;;  %v1412_v5 = vor.u32 %v1730_v56, %v1411_v55 }
  0x34   :  { %918 = vmatpush.bf16.msrb.mxu3 %v1644_v8  ;;  %v1762_v63 = vld [vmem:[#allocation3 + $0x304] sm:$0xf0]  ;;  %v1603_v0 = vld [vmem:[#allocation3 + $0x380] sm:$0xf]  ;;  %v1695_v4 = vld [vmem:[#allocation3 + $0xf4] sm:$0xf]  ;;  %v1476_v9 = vor.u32 %v1746_v60, %v1475_v59  ;;  %v1216_v14 = vor.u32 %v1679_v2, %v1213_v3 }
  0x35   :  { %880 = vmatpush.bf16.msrb.mxu0 %v1444_v15  ;;  %v1778_v1 = vld [vmem:[#allocation3 + $0x384] sm:$0xf0]  ;;  %v1277_v6 = vld [vmem:[#allocation3 + $0xf8] sm:$0xf0]  ;;  %v1711_v7 = vld [vmem:[#allocation3 + $0x174] sm:$0xf]  ;;  %v1540_v10 = vor.u32 %v1762_v63, %v1539_v61 }
  0x36   :  { %893 = vmatpush.bf16.msrb.mxu1 %v1508_v20  ;;  %v1341_v8 = vld [vmem:[#allocation3 + $0x178] sm:$0xf0]  ;;  %v1727_v11 = vld [vmem:[#allocation3 + $0x1f4] sm:$0xf]  ;;  %v1604_v13 = vor.u32 %v1778_v1, %v1603_v0  ;;  %v1677_v15 = vld [vmem:[#allocation3 + $0x64] sm:$0xf]  ;;  %v1280_v17 = vor.u32 %v1695_v4, %v1277_v6 }
  0x37   :  { %906 = vmatpush.bf16.msrb.mxu2 %v1572_v21  ;;  %v1405_v12 = vld [vmem:[#allocation3 + $0x1f8] sm:$0xf0]  ;;  %v1205_v16 = vld [vmem:[#allocation3 + $0x68] sm:$0xf0]  ;;  %v1344_v18 = vor.u32 %v1711_v7, %v1341_v8  ;;  %v1693_v19 = vld [vmem:[#allocation3 + $0xe4] sm:$0xf] }
  0x38   :  { %919 = vmatpush.bf16.msrb.mxu3 %v1636_v24  ;;  %v1269_v20 = vld [vmem:[#allocation3 + $0xe8] sm:$0xf0]  ;;  %v1709_v21 = vld [vmem:[#allocation3 + $0x164] sm:$0xf]  ;;  %v1408_v24 = vor.u32 %v1727_v11, %v1405_v12  ;;  %v1197_v32 = vld [vmem:[#allocation3 + $0x58] sm:$0xf0]  ;;  %v1208_v33 = vor.u32 %v1677_v15, %v1205_v16 }
  0x39   :  { %881 = vmatpush.bf16.msrb.mxu0 %v1436_v29  ;;  %v1333_v27 = vld [vmem:[#allocation3 + $0x168] sm:$0xf0]  ;;  %v1725_v28 = vld [vmem:[#allocation3 + $0x1e4] sm:$0xf]  ;;  %v1272_v36 = vor.u32 %v1693_v19, %v1269_v20  ;;  %v1691_v38 = vld [vmem:[#allocation3 + $0xd4] sm:$0xf] }
  0x3a   :  { %894 = vmatpush.bf16.msrb.mxu1 %v1500_v30  ;;  %v1397_v29 = vld [vmem:[#allocation3 + $0x1e8] sm:$0xf0]  ;;  %v1891_v34 = vld.sshfl [vmem:[#allocation1 + $0x20] sm:$0xff pattern:$0x73625140]  ;;  %v1336_v37 = vor.u32 %v1709_v21, %v1333_v27  ;;  %vm1063_vm2 = vcmask 1043458  }
  0x3b   :  { %907 = vmatpush.bf16.msrb.mxu2 %v1564_v31  ;;  %v1889_v30 = vld.sshfl [vmem:[#allocation1 + $0x30] sm:$0xff pattern:$0x73625140]  ;;  %v1675_v31 = vld [vmem:[#allocation3 + $0x54] sm:$0xf]  ;;  %v1400_v40 = vor.u32 %v1725_v28, %v1397_v29  ;;  %s1852_s0 = smov [#allocation6]  }
  0x3c   :  { %920 = vmatpush.bf16.msrb.mxu3 %v1628_v35  ;;  %v1893_v35 = vld.sshfl [vmem:[#allocation1 + $0x38] sm:$0xff pattern:$0x73625140]  ;;  %v1895_v39 = vld.sshfl [vmem:[#allocation1 + $0x28] sm:$0xff pattern:$0x73625140]  ;;  %v1200_v46 = vor.u32 %v1675_v31, %v1197_v32 }
  0x3d   :  { %882 = vmatpush.bf16.msrb.mxu0 %v1428_v41  ;;  %v1261_v41 = vld [vmem:[#allocation3 + $0xd8] sm:$0xf0]  ;;  %v1707_v42 = vld [vmem:[#allocation3 + $0x154] sm:$0xf]  ;;  %v1189_v50 = vld [vmem:[#allocation3 + $0x48] sm:$0xf0] }
  0x3e   :  { %895 = vmatpush.bf16.msrb.mxu1 %v1492_v44  ;;  %v1325_v43 = vld [vmem:[#allocation3 + $0x158] sm:$0xf0]  ;;  %v1723_v44 = vld [vmem:[#allocation3 + $0x1d4] sm:$0xf]  ;;  %v1264_v47 = vor.u32 %v1691_v38, %v1261_v41  ;;  %v1689_v51 = vld [vmem:[#allocation3 + $0xc4] sm:$0xf] }
  0x3f   :  { %908 = vmatpush.bf16.msrb.mxu2 %v1556_v45  ;;  %v1389_v45 = vld [vmem:[#allocation3 + $0x1d8] sm:$0xf0]  ;;  %v1328_v48 = vor.u32 %v1707_v42, %v1325_v43  ;;  %v1253_v53 = vld [vmem:[#allocation3 + $0xc8] sm:$0xf0]  ;;  %v1721_v56 = vld [vmem:[#allocation3 + $0x1c4] sm:$0xf] }
  0x40   :  { %921 = vmatpush.bf16.msrb.mxu3 %v1620_v49  ;;  %v1673_v49 = vld [vmem:[#allocation3 + $0x44] sm:$0xf]  ;;  %v1392_v52 = vor.u32 %v1723_v44, %v1389_v45  ;;  %v1317_v55 = vld [vmem:[#allocation3 + $0x148] sm:$0xf0]  ;;  %v1256_v59 = vor.u32 %v1689_v51, %v1253_v53  ;;  %v1671_v61 = vld [vmem:[#allocation3 + $0x34] sm:$0xf] }
  0x41   :  { %883 = vmatpush.bf16.msrb.mxu0 %v1420_v54  ;;  %v1705_v54 = vld [vmem:[#allocation3 + $0x144] sm:$0xf]  ;;  %v1687_v63 = vld [vmem:[#allocation3 + $0xb4] sm:$0xf]  ;;  %v1245_v1 = vld [vmem:[#allocation3 + $0xb8] sm:$0xf0] }
  0x42   :  { %896 = vmatpush.bf16.msrb.mxu1 %v1484_v57  ;;  %v1381_v57 = vld [vmem:[#allocation3 + $0x1c8] sm:$0xf0]  ;;  %v1320_v60 = vor.u32 %v1705_v54, %v1317_v55  ;;  %v1703_v2 = vld [vmem:[#allocation3 + $0x134] sm:$0xf]  ;;  %v1309_v3 = vld [vmem:[#allocation3 + $0x138] sm:$0xf0]  ;;  %v1248_v7 = vor.u32 %v1687_v63, %v1245_v1 }
  0x43   :  { %909 = vmatpush.bf16.msrb.mxu2 %v1548_v58  ;;  %v1192_v58 = vor.u32 %v1673_v49, %v1189_v50  ;;  %v1384_v0 = vor.u32 %v1721_v56, %v1381_v57  ;;  %v1719_v4 = vld [vmem:[#allocation3 + $0x1b4] sm:$0xf]  ;;  %v1312_v8 = vor.u32 %v1703_v2, %v1309_v3  ;;  %v1685_v11 = vld [vmem:[#allocation3 + $0xa4] sm:$0xf]  ;;  %v1301_v15 = vld [vmem:[#allocation3 + $0x128] sm:$0xf0] }
  0x44   :  { %922 = vmatpush.bf16.msrb.mxu3 %v1612_v62  ;;  %v1181_v62 = vld [vmem:[#allocation3 + $0x38] sm:$0xf0]  ;;  %v1717_v16 = vld [vmem:[#allocation3 + $0x1a4] sm:$0xf]  ;;  %v1667_v21 = vld [vmem:[#allocation3 + $0x14] sm:$0xf] }
  0x45   :  { %884 = vmatpush.bf16.msrb.mxu0 %v1412_v5  ;;  %v1373_v5 = vld [vmem:[#allocation3 + $0x1b8] sm:$0xf0]  ;;  %v1184_v6 = vor.u32 %v1671_v61, %v1181_v62  ;;  %v1683_v27 = vld [vmem:[#allocation3 + $0x94] sm:$0xf]  ;;  %v1665_v38 = vld [vmem:[#allocation3 + $0x4] sm:$0xf] }
  0x46   :  { %897 = vmatpush.bf16.msrb.mxu1 %v1476_v9  ;;  %v1669_v9 = vld [vmem:[#allocation3 + $0x24] sm:$0xf]  ;;  %v1376_v12 = vor.u32 %v1719_v4, %v1373_v5  ;;  %v1229_v29 = vld [vmem:[#allocation3 + $0x98] sm:$0xf0]  ;;  %v1699_v31 = vld [vmem:[#allocation3 + $0x114] sm:$0xf] }
  0x47   :  { %910 = vmatpush.bf16.msrb.mxu2 %v1540_v10  ;;  %v1173_v10 = vld [vmem:[#allocation3 + $0x28] sm:$0xf0]  ;;  %v1293_v32 = vld [vmem:[#allocation3 + $0x118] sm:$0xf0]  ;;  %v1232_v41 = vor.u32 %v1683_v27, %v1229_v29  ;;  %v1681_v43 = vld [vmem:[#allocation3 + $0x84] sm:$0xf] }
  0x48   :  { %923 = vmatpush.bf16.msrb.mxu3 %v1604_v13  ;;  %885 = vmatmul.bf16.vlgmr.msrb.gmra.mxu0 %v1891_v34  ;;  %v1237_v13 = vld [vmem:[#allocation3 + $0xa8] sm:$0xf0]  ;;  %v1296_v42 = vor.u32 %v1699_v31, %v1293_v32  ;;  %v1697_v45 = vld [vmem:[#allocation3 + $0x104] sm:$0xf]  ;;  %v1743_v50 = vld [vmem:[#allocation3 + $0x274] sm:$0xf] }
  0x49   :  { %929 = vmatpush.bf16.msra.mxu0 %v1216_v14  ;;  %898 = vmatmul.bf16.vlgmr.msrb.gmra.mxu1 %v1895_v39  ;;  %v1701_v14 = vld [vmem:[#allocation3 + $0x124] sm:$0xf]  ;;  %v1240_v19 = vor.u32 %v1685_v11, %v1237_v13  ;;  %v1221_v44 = vld [vmem:[#allocation3 + $0x88] sm:$0xf0]  ;;  %v1469_v51 = vld [vmem:[#allocation3 + $0x278] sm:$0xf0] }
  0x4a   :  { %942 = vmatpush.bf16.msra.mxu1 %v1280_v17  ;;  %911 = vmatmul.bf16.vlgmr.msrb.gmra.mxu2 %v1889_v30  ;;  %v1365_v17 = vld [vmem:[#allocation3 + $0x1a8] sm:$0xf0]  ;;  %v1304_v20 = vor.u32 %v1701_v14, %v1301_v15  ;;  %v1533_v54 = vld [vmem:[#allocation3 + $0x2f8] sm:$0xf0]  ;;  %v1775_v55 = vld [vmem:[#allocation3 + $0x374] sm:$0xf]  ;;  %v1224_v57 = vor.u32 %v1681_v43, %v1221_v44  ;;  %v1472_v62 = vor.u32 %v1743_v50, %v1469_v51 }
  0x4b   :  { %955 = vmatpush.bf16.msra.mxu2 %v1344_v18  ;;  %924 = vmatmul.bf16.vlgmr.msrb.gmra.mxu3 %v1893_v35  ;;  %v1176_v18 = vor.u32 %v1669_v9, %v1173_v10  ;;  %v1368_v28 = vor.u32 %v1717_v16, %v1365_v17  ;;  %v1349_v49 = vld [vmem:[#allocation3 + $0x188] sm:$0xf0]  ;;  %v1597_v56 = vld [vmem:[#allocation3 + $0x378] sm:$0xf0]  ;;  %v1741_v1 = vld [vmem:[#allocation3 + $0x264] sm:$0xf] }
  0x4c   :  { %968 = vmatpush.bf16.msra.mxu3 %v1408_v24  ;;  %v1165_v24 = vld [vmem:[#allocation3 + $0x18] sm:$0xf0]  ;;  %v1461_v2 = vld [vmem:[#allocation3 + $0x268] sm:$0xf0]  ;;  %v1757_v3 = vld [vmem:[#allocation3 + $0x2e4] sm:$0xf] }
  0x4d   :  { %930 = vmatpush.bf16.msra.mxu0 %v1208_v33  ;;  %v1715_v33 = vld [vmem:[#allocation3 + $0x194] sm:$0xf]  ;;  %v1525_v5 = vld [vmem:[#allocation3 + $0x2e8] sm:$0xf0]  ;;  %v1464_v10 = vor.u32 %v1741_v1, %v1461_v2  ;;  %v1453_v14 = vld [vmem:[#allocation3 + $0x258] sm:$0xf0] }
  0x4e   :  { %943 = vmatpush.bf16.msra.mxu1 %v1272_v36  ;;  %v1357_v36 = vld [vmem:[#allocation3 + $0x198] sm:$0xf0]  ;;  %v1653_v9 = vld [vmem:[#allocation3 + $0x3e8] sm:$0xf0]  ;;  %v1528_v11 = vor.u32 %v1757_v3, %v1525_v5  ;;  %v1739_v13 = vld [vmem:[#allocation3 + $0x254] sm:$0xf] }
  0x4f   :  { %956 = vmatpush.bf16.msra.mxu2 %v1336_v37  ;;  %v1168_v37 = vor.u32 %v1667_v21, %v1165_v24  ;;  %v1755_v15 = vld [vmem:[#allocation3 + $0x2d4] sm:$0xf]  ;;  %v1517_v17 = vld [vmem:[#allocation3 + $0x2d8] sm:$0xf0]  ;;  %v1456_v24 = vor.u32 %v1739_v13, %v1453_v14  ;;  %v1737_v29 = vld [vmem:[#allocation3 + $0x244] sm:$0xf] }
  0x50   :  { %969 = vmatpush.bf16.msra.mxu3 %v1400_v40  ;;  %v1157_v40 = vld [vmem:[#allocation3 + $0x8] sm:$0xf0]  ;;  %v1645_v21 = vld [vmem:[#allocation3 + $0x3d8] sm:$0xf0]  ;;  %v1520_v27 = vor.u32 %v1755_v15, %v1517_v17  ;;  %v1751_v43 = vld [vmem:[#allocation3 + $0x2b4] sm:$0xf] }
  0x51   :  { %931 = vmatpush.bf16.msra.mxu0 %v1200_v46  ;;  %v1360_v46 = vor.u32 %v1715_v33, %v1357_v36  ;;  %v1160_v53 = vor.u32 %v1665_v38, %v1157_v40  ;;  %v1445_v31 = vld [vmem:[#allocation3 + $0x248] sm:$0xf0]  ;;  %v1769_v36 = vld [vmem:[#allocation3 + $0x344] sm:$0xf]  ;;  %v1731_v1 = vld [vmem:[#allocation3 + $0x214] sm:$0xf] }
  0x52   :  { %944 = vmatpush.bf16.msra.mxu1 %v1264_v47  ;;  %v1285_v47 = vld [vmem:[#allocation3 + $0x108] sm:$0xf0]  ;;  %v1785_v38 = vld [vmem:[#allocation3 + $0x3c4] sm:$0xf]  ;;  %v1421_v2 = vld [vmem:[#allocation3 + $0x218] sm:$0xf0] }
  0x53   :  { %957 = vmatpush.bf16.msra.mxu2 %v1328_v48  ;;  %v1713_v48 = vld [vmem:[#allocation3 + $0x184] sm:$0xf]  ;;  %v1509_v33 = vld [vmem:[#allocation3 + $0x2c8] sm:$0xf0]  ;;  %v1747_v3 = vld [vmem:[#allocation3 + $0x294] sm:$0xf] }
  0x54   :  { %970 = vmatpush.bf16.msra.mxu3 %v1392_v52  ;;  %v1759_v52 = vld [vmem:[#allocation3 + $0x2f4] sm:$0xf]  ;;  %v1352_v61 = vor.u32 %v1713_v48, %v1349_v49  ;;  %v1629_v49 = vld [vmem:[#allocation3 + $0x3b8] sm:$0xf0]  ;;  %v1729_v13 = vld [vmem:[#allocation3 + $0x204] sm:$0xf] }
  0x55   :  { %932 = vmatpush.bf16.msra.mxu0 %v1192_v58  ;;  %v1288_v58 = vor.u32 %v1697_v45, %v1285_v47  ;;  %v1536_v63 = vor.u32 %v1759_v52, %v1533_v54  ;;  %v1501_v45 = vld [vmem:[#allocation3 + $0x2b8] sm:$0xf0]  ;;  %v1783_v48 = vld [vmem:[#allocation3 + $0x3b4] sm:$0xf]  ;;  %v1429_v54 = vld [vmem:[#allocation3 + $0x228] sm:$0xf0] }
  0x56   :  { %945 = vmatpush.bf16.msra.mxu1 %v1256_v59  ;;  %v1791_v59 = vld [vmem:[#allocation3 + $0x3f4] sm:$0xf]  ;;  %v1565_v47 = vld [vmem:[#allocation3 + $0x338] sm:$0xf0]  ;;  %v1504_v51 = vor.u32 %v1751_v43, %v1501_v45  ;;  %v1413_v14 = vld [vmem:[#allocation3 + $0x208] sm:$0xf0] }
  0x57   :  { %958 = vmatpush.bf16.msra.mxu2 %v1320_v60  ;;  %v1661_v60 = vld [vmem:[#allocation3 + $0x3f8] sm:$0xf0]  ;;  %v1745_v15 = vld [vmem:[#allocation3 + $0x284] sm:$0xf]  ;;  %v1477_v17 = vld [vmem:[#allocation3 + $0x288] sm:$0xf0] }
  0x58   :  { %971 = vmatpush.bf16.msra.mxu3 %v1384_v0  ;;  %v1600_v0 = vor.u32 %v1775_v55, %v1597_v56  ;;  %v1664_v4 = vor.u32 %v1791_v59, %v1661_v60  ;;  %v1749_v55 = vld [vmem:[#allocation3 + $0x2a4] sm:$0xf]  ;;  %v1632_v56 = vor.u32 %v1783_v48, %v1629_v49  ;;  %v1557_v59 = vld [vmem:[#allocation3 + $0x328] sm:$0xf0]  ;;  %v1485_v5 = vld [vmem:[#allocation3 + $0x298] sm:$0xf0] }
  0x59   :  { %933 = vmatpush.bf16.msra.mxu0 %v1184_v6  ;;  %v1773_v6 = vld [vmem:[#allocation3 + $0x364] sm:$0xf]  ;;  %s1141_s19 = sshll.u32 %s1852_s0, 4  ;;  %s1143_s22 = sshll.u32 %s1914_s2, 4  ;;  %vm1134_vm3 = vcmask 11266   ;;  %s1142_s19 = int_to_ptr.vmem [resolvable:$true] %s1141_s19  ;;  %s1144_s22 = int_to_ptr.hbm [resolvable:$true] %s1143_s22 }
  0x5a   :  { %946 = vmatpush.bf16.msra.mxu1 %v1248_v7  ;;  %v1589_v7 = vld [vmem:[#allocation3 + $0x368] sm:$0xf0]  ;;  %v1781_v60 = vld [vmem:[#allocation3 + $0x3a4] sm:$0xf] }
  0x5b   :  { %959 = vmatpush.bf16.msra.mxu2 %v1312_v8  ;;  %v1789_v8 = vld [vmem:[#allocation3 + $0x3e4] sm:$0xf] }
  0x5c   :  { %972 = vmatpush.bf16.msra.mxu3 %v1376_v12  ;;  %v1592_v12 = vor.u32 %v1773_v6, %v1589_v7  ;;  %v1656_v16 = vor.u32 %v1789_v8, %v1653_v9  ;;  %v1763_v6 = vld [vmem:[#allocation3 + $0x314] sm:$0xf]  ;;  %v1549_v7 = vld [vmem:[#allocation3 + $0x318] sm:$0xf0] }
  0x5d   :  { %934 = vmatpush.bf16.msra.mxu0 %v1176_v18  ;;  %v1771_v18 = vld [vmem:[#allocation3 + $0x354] sm:$0xf]  ;;  %v1613_v9 = vld [vmem:[#allocation3 + $0x398] sm:$0xf0] }
  0x5e   :  { %947 = vmatpush.bf16.msra.mxu1 %v1240_v19  ;;  %v1581_v19 = vld [vmem:[#allocation3 + $0x358] sm:$0xf0]  ;;  %v1779_v8 = vld [vmem:[#allocation3 + $0x394] sm:$0xf] }
  0x5f   :  { %960 = vmatpush.bf16.msra.mxu2 %v1304_v20  ;;  %v1787_v20 = vld [vmem:[#allocation3 + $0x3d4] sm:$0xf] }
  0x60   :  { %973 = vmatpush.bf16.msra.mxu3 %v1368_v28  ;;  %v1584_v28 = vor.u32 %v1771_v18, %v1581_v19  ;;  %v1648_v32 = vor.u32 %v1787_v20, %v1645_v21  ;;  %v1761_v18 = vld [vmem:[#allocation3 + $0x304] sm:$0xf]  ;;  %v1541_v19 = vld [vmem:[#allocation3 + $0x308] sm:$0xf0] }
  0x61   :  { %935 = vmatpush.bf16.msra.mxu0 %v1168_v37  ;;  %v1573_v37 = vld [vmem:[#allocation3 + $0x348] sm:$0xf0]  ;;  %v1777_v20 = vld [vmem:[#allocation3 + $0x384] sm:$0xf] }
  0x62   :  { %948 = vmatpush.bf16.msra.mxu1 %v1232_v41  ;;  %v1735_v41 = vld [vmem:[#allocation3 + $0x234] sm:$0xf]  ;;  %v1605_v21 = vld [vmem:[#allocation3 + $0x388] sm:$0xf0] }
  0x63   :  { %961 = vmatpush.bf16.msra.mxu2 %v1296_v42  ;;  %v1437_v42 = vld [vmem:[#allocation3 + $0x238] sm:$0xf0] }
  0x64   :  { %974 = vmatpush.bf16.msra.mxu3 %v1360_v46  ;;  %v1767_v46 = vld [vmem:[#allocation3 + $0x334] sm:$0xf]  ;;  %v1440_v50 = vor.u32 %v1735_v41, %v1437_v42 }
  0x65   :  { %936 = vmatpush.bf16.msra.mxu0 %v1160_v53  ;;  %v1568_v52 = vor.u32 %v1767_v46, %v1565_v47  ;;  %v1733_v53 = vld [vmem:[#allocation3 + $0x224] sm:$0xf] }
  0x66   :  { %949 = vmatpush.bf16.msra.mxu1 %v1224_v57  ;;  %v1493_v57 = vld [vmem:[#allocation3 + $0x2a8] sm:$0xf0] }
  0x67   :  { %962 = vmatpush.bf16.msra.mxu2 %v1288_v58  ;;  %v1765_v58 = vld [vmem:[#allocation3 + $0x324] sm:$0xf] }
  0x68   :  { %975 = vmatpush.bf16.msra.mxu3 %v1352_v61  ;;  %937 = vmatmul.bf16.vlgmr.msra.gmra.mxu0 %v1876_v23  ;;  %v1637_v23 = vld [vmem:[#allocation3 + $0x3c8] sm:$0xf0] }
  0x69   :  { %981 = vmatpush.bf16.msrb.mxu0 %v1472_v62  ;;  %950 = vmatmul.bf16.vlgmr.msra.gmra.mxu1 %v1881_v26  ;;  %v1576_v26 = vor.u32 %v1769_v36, %v1573_v37  ;;  %v1640_v44 = vor.u32 %v1785_v38, %v1637_v23  ;;  %v1621_v61 = vld [vmem:[#allocation3 + $0x3a8] sm:$0xf0]  ;;  %v1432_v62 = vor.u32 %v1733_v53, %v1429_v54 }
  0x6a   :  { %994 = vmatpush.bf16.msrb.mxu1 %v1536_v63  ;;  %963 = vmatmul.bf16.vlgmr.msra.gmra.mxu2 %v1874_v22  ;;  %v1753_v22 = vld [vmem:[#allocation3 + $0x2c4] sm:$0xf]  ;;  %v1496_v63 = vor.u32 %v1749_v55, %v1493_v57 }
  0x6b   :  { %1007 = vmatpush.bf16.msrb.mxu2 %v1600_v0  ;;  %976 = vmatmul.bf16.vlgmr.msra.gmra.mxu3 %v1879_v25  ;;  %v1448_v25 = vor.u32 %v1737_v29, %v1445_v31  ;;  %v1512_v40 = vor.u32 %v1753_v22, %v1509_v33  ;;  %v1560_v0 = vor.u32 %v1765_v58, %v1557_v59 }
  0x6c   :  { %1020 = vmatpush.bf16.msrb.mxu3 %v1664_v4  ;;  %v1624_v4 = vor.u32 %v1781_v60, %v1621_v61  ;;  %v1608_v29 = vor.u32 %v1777_v20, %v1605_v21 }
  0x6d   :  { %982 = vmatpush.bf16.msrb.mxu0 %v1464_v10  ;;  %v1424_v10 = vor.u32 %v1731_v1, %v1421_v2 }
  0x6e   :  { %995 = vmatpush.bf16.msrb.mxu1 %v1528_v11  ;;  %v1488_v11 = vor.u32 %v1747_v3, %v1485_v5 }
  0x6f   :  { %1008 = vmatpush.bf16.msrb.mxu2 %v1592_v12  ;;  %v1552_v12 = vor.u32 %v1763_v6, %v1549_v7 }
  0x70   :  { %1021 = vmatpush.bf16.msrb.mxu3 %v1656_v16  ;;  %v1616_v16 = vor.u32 %v1779_v8, %v1613_v9 }
  0x71   :  { %983 = vmatpush.bf16.msrb.mxu0 %v1456_v24  ;;  %v1416_v24 = vor.u32 %v1729_v13, %v1413_v14 }
  0x72   :  { %996 = vmatpush.bf16.msrb.mxu1 %v1520_v27  ;;  %v1480_v27 = vor.u32 %v1745_v15, %v1477_v17 }
  0x73   :  { %1009 = vmatpush.bf16.msrb.mxu2 %v1584_v28  ;;  %v1544_v28 = vor.u32 %v1761_v18, %v1541_v19 }
  0x74   :  { %1022 = vmatpush.bf16.msrb.mxu3 %v1648_v32 }
  0x75   :  { %984 = vmatpush.bf16.msrb.mxu0 %v1448_v25 }
  0x76   :  { %997 = vmatpush.bf16.msrb.mxu1 %v1512_v40 }
  0x77   :  { %1010 = vmatpush.bf16.msrb.mxu2 %v1576_v26 }
  0x78   :  { %1023 = vmatpush.bf16.msrb.mxu3 %v1640_v44 }
  0x79   :  { %985 = vmatpush.bf16.msrb.mxu0 %v1440_v50 }
  0x7a   :  { %998 = vmatpush.bf16.msrb.mxu1 %v1504_v51 }
  0x7b   :  { %1011 = vmatpush.bf16.msrb.mxu2 %v1568_v52 }
  0x7c   :  { %1024 = vmatpush.bf16.msrb.mxu3 %v1632_v56 }
  0x7d   :  { %986 = vmatpush.bf16.msrb.mxu0 %v1432_v62 }
  0x7e   :  { %999 = vmatpush.bf16.msrb.mxu1 %v1496_v63 }
  0x7f   :  { %1012 = vmatpush.bf16.msrb.mxu2 %v1560_v0 }
  0x80   :  { %1025 = vmatpush.bf16.msrb.mxu3 %v1624_v4 }
  0x81   :  { %987 = vmatpush.bf16.msrb.mxu0 %v1424_v10 }
  0x82   :  { %1000 = vmatpush.bf16.msrb.mxu1 %v1488_v11 }
  0x83   :  { %1013 = vmatpush.bf16.msrb.mxu2 %v1552_v12 }
  0x84   :  { %1026 = vmatpush.bf16.msrb.mxu3 %v1616_v16 }
  0x85   :  { %988 = vmatpush.bf16.msrb.mxu0 %v1416_v24 }
  0x86   :  { %1001 = vmatpush.bf16.msrb.mxu1 %v1480_v27 }
  0x87   :  { %1014 = vmatpush.bf16.msrb.mxu2 %v1544_v28 }
  0x88   :  { %1027 = vmatpush.bf16.msrb.mxu3 %v1608_v29  ;;  %989 = vmatmul.bf16.vlgmr.msrb.gmra.mxu0 %v1891_v34 }
  0x89   :  { %1002 = vmatmul.bf16.vlgmr.msrb.gmra.mxu1 %v1895_v39 }
  0x8a   :  { %1015 = vmatmul.bf16.vlgmr.msrb.gmra.mxu2 %v1889_v30 }
  0x8b   :  { %1028 = vmatmul.bf16.vlgmr.msrb.gmra.mxu3 %v1893_v35 }
  0xab   :  { %v834_v31 = vpop.f32.mrf.mxu0 }
  0xac   :  { %v847_v22 = vpop.f32.mrf.mxu1 }
  0xad   :  { %v848_v32 = vadd.f32 %v847_v22, %v834_v31 }
  0xaf   :  { %v860_v33 = vpop.f32.mrf.mxu2 }
  0xb0   :  { %v861_v36 = vadd.f32 %v860_v33, %v848_v32  ;;  %v873_v37 = vpop.f32.mrf.mxu3  ;;  %v1123_v32 = vlaneseq }
  0xb2   :  { %v874_v38 = vadd.f32 %v873_v37, %v861_v36  ;;  %v1124_v33 = vand.u32 127, %v1123_v32 }
  0xb3   :  { %v836_v23 = vpop.f32.mrf.mxu0 }
  0xb4   :  { %v849_v25 = vpop.f32.mrf.mxu1 }
  0xb7   :  { %v862_v40 = vpop.f32.mrf.mxu2 }
  0xb8   :  { %v875_v26 = vpop.f32.mrf.mxu3 }
  0xc5   :  { %v886_v41 = vpop.f32.mrf.mxu0 }
  0xc6   :  { %v887_v42 = vadd.f32 %v886_v41, %v874_v38  ;;  %v899_v34 = vpop.f32.mrf.mxu1 }
  0xc8   :  { %v900_v43 = vadd.f32 %v899_v34, %v887_v42 }
  0xcd   :  { %v912_v39 = vpop.f32.mrf.mxu2  ;;  %v888_v30 = vpop.f32.mrf.mxu0 }
  0xce   :  { %v925_v44 = vpop.f32.mrf.mxu3  ;;  %v901_v45 = vpop.f32.mrf.mxu1  ;;  %v913_v63 = vadd.f32 %v912_v39, %v900_v43 }
  0xd0   :  { %v926_v5 = vadd.f32 %v925_v44, %v913_v63 }
  0xd5   :  { %v914_v35 = vpop.f32.mrf.mxu2 }
  0xd6   :  { %v927_v46 = vpop.f32.mrf.mxu3 }
  0xe5   :  { %v938_v47 = vpop.f32.mrf.mxu0 }
  0xe6   :  { %v951_v48 = vpop.f32.mrf.mxu1 }
  0xe7   :  { %v952_v55 = vadd.f32 %v951_v48, %v938_v47 }
  0xed   :  { %v964_v49 = vpop.f32.mrf.mxu2  ;;  %v940_v51 = vpop.f32.mrf.mxu0 }
  0xee   :  { %v977_v50 = vpop.f32.mrf.mxu3  ;;  %v953_v52 = vpop.f32.mrf.mxu1  ;;  %v965_v56 = vadd.f32 %v964_v49, %v952_v55 }
  0xf0   :  { %v978_v57 = vadd.f32 %v977_v50, %v965_v56 }
  0xf5   :  { %v966_v53 = vpop.f32.mrf.mxu2 }
  0xf6   :  { %v979_v54 = vpop.f32.mrf.mxu3 }
 0x105   :  { %v990_v58 = vpop.f32.mrf.mxu0 }
 0x106   :  { %v1003_v59 = vpop.f32.mrf.mxu1  ;;  %v991_v60 = vadd.f32 %v990_v58, %v978_v57 }
 0x108   :  { %v1004_v61 = vadd.f32 %v1003_v59, %v991_v60 }
 0x10d   :  { %v1016_v62 = vpop.f32.mrf.mxu2  ;;  %v992_v2 = vpop.f32.mrf.mxu0 }
 0x10e   :  { %v1017_v0 = vadd.f32 %v1016_v62, %v1004_v61  ;;  %v1029_v1 = vpop.f32.mrf.mxu3  ;;  %v1005_v3 = vpop.f32.mrf.mxu1 }
 0x110   :  { %v1030_v4 = vadd.f32 %v1029_v1, %v1017_v0 }
 0x112   :  { %v1035_v6 = vrot.slane %v1030_v4, 4 }
 0x114   :  { %v1037_v7 = vsel %vm1036_vm0, %v926_v5, %v1035_v6 }
 0x115   :  { %v1045_v8 = vmul.f32 %v1037_v7, %v1037_v7  ;;  %v1018_v9 = vpop.f32.mrf.mxu2 }
 0x116   :  { %v1031_v10 = vpop.f32.mrf.mxu3 }
 0x117   :  { %1047 = vst [vmem:[#allocation1] ss:$2 sm:$0xff] %v1045_v8 }
 0x11e   :  { %v1048_v11 = vld.sshfl [vmem:[#allocation1] sm:$0xff pattern:$0x75316420]  ;;  %v1049_v12 = vld.sshfl [vmem:[#allocation1 + $0x8] sm:$0xff pattern:$0x75316420] }
 0x11f   :  { %v1053_v13 = vsel %vm1052_vm1, %v1048_v11, 0.0  ;;  %v1054_v14 = vsel %vm1052_vm1, %v1049_v12, 0.0  ;;  %1058 = vst [vmem:[#allocation1] ss:$2 sm:$0xff] %v1045_v8 }
 0x120   :  { %v1055_v15 = vadd.f32 %v1054_v14, %v1053_v13 }
 0x122   :  { %1056 = vadd.xlane.f32.xlu0 %v1055_v15 }
 0x126   :  { %v1059_v16 = vld.sshfl [vmem:[#allocation1] sm:$0xff pattern:$0x75316420]  ;;  %v1060_v17 = vld.sshfl [vmem:[#allocation1 + $0x8] sm:$0xff pattern:$0x75316420] }
 0x127   :  { %v1064_v18 = vsel %vm1063_vm2, %v1059_v16, 0.0  ;;  %v1065_v19 = vsel %vm1063_vm2, %v1060_v17, 0.0  ;;  %1070 = vst [vmem:[#allocation1] ss:$2 sm:$0xff] %v1037_v7 }
 0x128   :  { %v1066_v20 = vadd.f32 %v1065_v19, %v1064_v18 }
 0x12a   :  { %1067 = vadd.xlane.f32.xlu0 %v1066_v20 }
 0x12e   :  { %v1071_v21 = vld.sshfl [vmem:[#allocation1] sm:$0xff pattern:$0x75316420]  ;;  %v1072_v24 = vld.sshfl [vmem:[#allocation1 + $0x8] sm:$0xff pattern:$0x75316420] }
 0x12f   :  { %1077 = vst [vmem:[#allocation1] ss:$2 sm:$0xff] %v1037_v7  ;;  %v1073_v29 = vrot.slane %v1071_v21, 2  ;;  %v1074_v31 = vrot.slane %v1072_v24, 2 }
 0x136   :  { %v1078_v27 = vld.sshfl [vmem:[#allocation1] sm:$0xff pattern:$0x75316420]  ;;  %v1079_v28 = vld.sshfl [vmem:[#allocation1 + $0x8] sm:$0xff pattern:$0x75316420] }
 0x137   :  { %1097 = vmatpush.xpose.msra.mxu0 %v1078_v27  ;;  %1117 = vmatpush.xpose.msra.mxu1 %v1079_v28 }
 0x13a   :  { %1098 = vmatmul.f32.vlgmr.msra.gmra.mxu0 %v1073_v29  ;;  %1118 = vmatmul.f32.vlgmr.msra.gmra.mxu1 %v1074_v31 }
 0x195   :  { %v1057_v22 = vpop.xlane.xlu0 %1056 }
 0x196   :  { %v1125_v25 = vperm.slane %v1057_v22, %v1124_v33 }
 0x19d   :  { %v1068_v23 = vpop.xlane.xlu0 %1067 }
 0x19e   :  { %v1127_v26 = vadd.f32 %v1125_v25, %v1068_v23 }
 0x1b7   :  { %v1099_v36 = vpop.f32.mrf.mxu0  ;;  %v1119_v37 = vpop.f32.mrf.mxu1 }
 0x1b8   :  { %v1120_v38 = vadd.f32 %v1119_v37, %v1099_v36 }
 0x1ba   :  { %v1128_v40 = vmul.f32 2.0, %v1120_v38 }
 0x1bc   :  { %v1130_v41 = vrot.slane %v1128_v40, 6 }
 0x1be   :  { %v1132_v42 = vsub.f32 %v1127_v26, %v1130_v41 }
 0x1c0   :  { %v1133_v34 = vmax.f32 %v1132_v42, 0.0 }
 0x1c2   :  { %1135 = vst.msk [vmem:[#allocation6 - $0x2] sm:$0xc] %vm1134_vm3, %v1133_v34 }
 0x1c3   :  { %1146 = dma.vmem_to_hbm [thread:$0]  %s1142_s19, 32, %s1144_s22, [#allocation5]  }
 0x1c4   :  { %1847 = dma.done.wait [#allocation5], 32  }
 0x1c5   :  { %1848 = vsyncadd [#allocation5], 4294967264 }
 0x1c6   :  { %1151 = vsyncpa [#allocation4], 1 }
 0x1c7   :  { %1152 = vsyncpa [#allocation5], 1 }

</bundles_post_ra>
